<compile_context>
chip_gen: v5e
topology: v5e:2x2
jax: 0.10.0
libtpu: 0.0.40
codegen_flags: <defaults>
</compile_context>

<pallas_src>
import jax
import jax.numpy as jnp
from jax.experimental import pallas as pl
from jax.experimental.pallas import tpu as pltpu


# Fill value for padded cells: exp(-1e30 - m) underflows to exactly 0.0 in f32,
# so padded lanes contribute nothing to the row max or the row sum.
_NEG_FILL = -1e30


# ----------------------------- Pallas kernel ------------------------------ #

def _rowwise_softmax_kernel(x_ref, o_ref):
    """Numerically-stable softmax over the last axis of the whole block."""
    x = x_ref[...].astype(jnp.float32)
    m = jnp.max(x, axis=-1, keepdims=True)    # XLU cross-lane reduce
    e = jnp.exp(x - m)                        # EUP transcendental
    s = jnp.sum(e, axis=-1, keepdims=True)    # XLU cross-lane reduce
    # Exact divide (VPU).  NOTE: do not use pl.reciprocal(approx=True) here —
    # its relative error (~1e-3..1e-4) breaks the softmax/row-sum tolerances.
    o_ref[...] = (e / s).astype(o_ref.dtype)


def rowwise_softmax(x: jax.Array) -> jax.Array:
    """Softmax along axis=-1 of a small 2-D slab via a gridless Pallas call.

    The whole (R, C) slab is one VMEM-resident block: block_shape equals the
    full array dims, so there is no grid / pipeline bookkeeping at all.
    """
    R, C = x.shape
    return pl.pallas_call(
        _rowwise_softmax_kernel,
        out_shape=jax.ShapeDtypeStruct((R, C), x.dtype),
        in_specs=[pl.BlockSpec(memory_space=pltpu.MemorySpace.VMEM)],
        out_specs=pl.BlockSpec(memory_space=pltpu.MemorySpace.VMEM),
    )(x)


# --------------------------- Module re-implementation ---------------------- #

def _round_up(v: int, m: int) -> int:
    return ((v + m - 1) // m) * m


class SearchRCNNController:
    """JAX/Pallas re-implementation of SearchRCNNController's forward pass.

    Alphas have the same shapes as the PyTorch ParameterList: for each of
    `n_module` modules and each node i in [0, n_nodes), alpha has shape
    (i + 2, n_ops), initialized as 0.001 * N(0, 1).  They are stored
    pre-concatenated (and padded to (8,128)-aligned dims) in one slab; per-
    alpha views are recovered by static slicing inside the jitted forward.
    """

    def __init__(self, n_layers, n_nodes=4, stem_multiplier=3, n_module=1,
                 n_ops=8, backbone_out_channels=4, key=None):
        del n_layers, stem_multiplier  # signature parity; unused in forward
        if key is None:
            key = jax.random.PRNGKey(0)
        self.n_nodes = n_nodes
        self.n_module = n_module
        self.n_ops = n_ops  # stand-in for 2 + sum(stack primitives) in gt.PRIMITIVES
        self.C = backbone_out_channels  # cfg_det.MODEL.RESNETS.BACKBONE_OUT_CHANNELS

        # Per-alpha row counts (static): (i+2, n_ops) per node per module.
        self._row_sizes = [i + 2 for _ in range(n_module) for i in range(n_nodes)]
        self._offsets = [0]
        for r in self._row_sizes:
            self._offsets.append(self._offsets[-1] + r)
        total_rows = self._offsets[-1]

        # Hardware-aligned padded slab: rows -> multiple of 8 (sublanes),
        # cols -> multiple of 128 (lanes).  Pad cells hold _NEG_FILL so the
        # row softmax over the valid columns is unaffected by padding.
        self._rows = total_rows
        rows_p = _round_up(total_rows, 8)
        cols_p = _round_up(n_ops, 128)

        vals = 0.001 * jax.random.normal(key, (total_rows, n_ops),
                                         dtype=jnp.float32)
        slab = jnp.full((rows_p, cols_p), _NEG_FILL, dtype=jnp.float32)
        self.alpha_slab = slab.at[:total_rows, :n_ops].set(vals)

        # TODO(synk): self.net = build_detection_model(cfg_det) is an external
        # detection model (not defined in this module); no Pallas equivalent.

        offsets = tuple(self._offsets)
        row_sizes = tuple(self._row_sizes)
        n_ops_static = n_ops

        @jax.jit
        def _forward(alpha_slab, x):
            sm = rowwise_softmax(alpha_slab)
            weights = tuple(
                jax.lax.slice(sm, (offsets[k], 0),
                              (offsets[k + 1], n_ops_static))
                for k in range(len(row_sizes)))
            # Single-device PyTorch path: return self.net(x, targets, weights).
            # TODO(synk): external detection-net forward not translatable;
            # forward x untouched along with the weights it would consume.
            return x, weights

        self._forward = _forward

    @property
    def alpha_normal(self):
        """Per-alpha views (same shapes as the PyTorch ParameterList)."""
        return [self.alpha_slab[self._offsets[k]:self._offsets[k + 1], :self.n_ops]
                for k in range(len(self._row_sizes))]

    def forward(self, x, targets=None):
        del targets  # only consumed by the external detection net
        x_out, weights = self._forward(self.alpha_slab, x)
        return x_out, list(weights)

    def alphas(self):
        for a in self.alpha_normal:
            yield a


# --------------------------------- Driver ---------------------------------- #

if __name__ == "__main__":
    key = jax.random.PRNGKey(0)
    k_alpha, k_x = jax.random.split(key)

    # Small, module-consistent shapes: n_module=1, n_nodes=4, n_ops=8
    # -> alphas of shapes (2,8), (3,8), (4,8), (5,8)  (14 total rows).
    model = SearchRCNNController(n_layers=8, n_nodes=4, n_module=1,
                                 n_ops=8, backbone_out_channels=4, key=k_alpha)

    # x in NCHW, only forwarded (the detection net is external).
    x = jax.random.normal(k_x, (2, 4, 16, 16), dtype=jnp.float32)

    x_out, weights_normal = model.forward(x)
    x_out = jax.block_until_ready(x_out)
    weights_normal = [jax.block_until_ready(w) for w in weights_normal]

    # Correctness check vs. pure-JAX reference softmax on the un-padded alphas.
    ok = True
    for a, w in zip(model.alpha_normal, weights_normal):
        ref = jax.nn.softmax(a, axis=-1)
        ok &= bool(jnp.allclose(w, ref, atol=1e-5, rtol=1e-5))
        ok &= bool(jnp.allclose(jnp.sum(w, axis=-1), 1.0, atol=1e-4))
        ok &= w.shape == a.shape
    ok &= bool(jnp.allclose(x_out, x))

    if ok:
        print("KERNEL_OK")
    else:
        raise SystemExit("kernel output mismatch vs. reference softmax")
</pallas_src>

<mosaic_0001>
module attributes {stable_mosaic.version = 11 : i64} {
  func.func @_rowwise_softmax_kernel(%arg0: memref<16x128xf32, #tpu.memory_space<vmem>>, %arg1: memref<16x128xf32, #tpu.memory_space<vmem>>) attributes {dimension_semantics = [], scalar_prefetch = 0 : i64, scratch_operands = 0 : i64, tpu.core_type = #tpu.core_type<tc>} {
    %c0 = arith.constant 0 : index
    %c0_0 = arith.constant 0 : index
    %0 = vector.load %arg0[%c0, %c0_0] : memref<16x128xf32, #tpu.memory_space<vmem>>, vector<16x128xf32>
    %cst = arith.constant dense<0xFF800000> : vector<16xf32>
    %1 = vector.multi_reduction <maximumf>, %0, %cst [1] : vector<16x128xf32> to vector<16xf32>
    %2 = vector.shape_cast %1 : vector<16xf32> to vector<16x1xf32>
    %3 = vector.broadcast %2 : vector<16x1xf32> to vector<16x128xf32>
    %4 = arith.subf %0, %3 : vector<16x128xf32>
    %5 = math.exp %4 : vector<16x128xf32>
    %cst_1 = arith.constant dense<0.000000e+00> : vector<16xf32>
    %6 = vector.multi_reduction <add>, %5, %cst_1 [1] : vector<16x128xf32> to vector<16xf32>
    %7 = vector.shape_cast %6 : vector<16xf32> to vector<16x1xf32>
    %8 = vector.broadcast %7 : vector<16x1xf32> to vector<16x128xf32>
    %9 = arith.divf %5, %8 : vector<16x128xf32>
    %c0_2 = arith.constant 0 : index
    %c0_3 = arith.constant 0 : index
    %10 = vector.load %arg1[%c0_2, %c0_3] : memref<16x128xf32, #tpu.memory_space<vmem>>, vector<16x128xf32>
    tpu.vector_store %arg1[%c0_2, %c0_3], %9 {strides = array<i32>} : memref<16x128xf32, #tpu.memory_space<vmem>>, vector<16x128xf32>,
    return
  }
}

</mosaic_0001>

<bundles_post_ra>
// kernel: _forward.1
= control target key start
LH: loop header
LB: loop body
LE: loop exit
PB: predicated region body
PF: predicated region fallthrough
CT: control target
= control target key end

     0   :  { %6 = vsyncpa [#allocation3], 0  ;;  %s114_s9 = smov [#allocation2]   ;;  %s115_s11 = smov 128   ;;  %s136_s0 = inlined_call_operand.hbm [shape: f32[16,128], index: 0, kind: input, shape index: {}]   ;;  %s137_s1 = inlined_call_operand.vmem [shape: f32[16,128], index: 1, kind: output, shape index: {}]  }
   0x1   :  { %s11_s8 = sshll.u32 %s136_s0, 4  ;;  %s13_s10 = sshll.u32 %s114_s9, 4  ;;  %s12_s8 = int_to_ptr.hbm [resolvable:$true] %s11_s8  ;;  %s14_s10 = int_to_ptr.vmem [resolvable:$true] %s13_s10 }
   0x2   :  { %s116_s12 = smov 8  }
   0x3   :  { %19 = dma.hbm_to_vmem [thread:$0]  %s12_s8, 256, %s14_s10, [#allocation3], %s115_s11, %s115_s11, %s116_s12  }
   0x4   :  { %112 = dma.done.wait [#allocation3], 256  }
   0x5   :  { %113 = vsyncadd [#allocation3], 4294967040  ;;  %v24_v0 = vld [vmem:[#allocation2] sm:$0xff]  ;;  %v25_v1 = vld [vmem:[#allocation2 + $0x8] sm:$0xff] }
   0x6   :  { %26 = vmax.xlane.f32.xlu0 %v24_v0 }
   0xe   :  { %28 = vmax.xlane.f32.xlu0 %v25_v1 }
  0x79   :  { %v27_v2 = vpop.xlane.xlu0 %26 }
  0x7a   :  { %v30_v3 = vsub.f32 %v24_v0, %v27_v2 }
  0x7c   :  { %v32_v4 = vmul.f32 1.442695, %v30_v3 }
  0x7e   :  { %80 = vpow2.f32 %v32_v4 }
  0x81   :  { %v29_v5 = vpop.xlane.xlu0 %28 }
  0x82   :  { %v31_v6 = vsub.f32 %v25_v1, %v29_v5 }
  0x84   :  { %v81_v7 = vpop.eup %80  ;;  %v34_v8 = vmul.f32 1.442695, %v31_v6 }
  0x85   :  { %36 = vadd.xlane.f32.xlu1 %v81_v7 }
  0x86   :  { %82 = vpow2.f32 %v34_v8 }
  0x8c   :  { %v83_v9 = vpop.eup %82 }
  0x8d   :  { %38 = vadd.xlane.f32.xlu1 %v83_v9 }
  0xf8   :  { %v37_v10 = vpop.xlane.xlu1 %36 }
  0xf9   :  { %84 = vrcp.f32 %v37_v10  ;;  %v51_v15 = vand.u32 2147483648, %v37_v10  ;;  %v49_v17 = vand.u32 2147483647, %v37_v10  ;;  %vm45_vm1 = vweird.f32 %v37_v10 }
  0xfb   :  { %v52_v20 = vor.u32 1.1754944e-38, %v51_v15  ;;  %vm50_vm3 = vcmp.eq.f32.partialorder %v49_v17, 8.507059e+37 }
  0xff   :  { %v85_v11 = vpop.eup %84 }
 0x100   :  { %v41_v12 = vmul.f32 %v85_v11, %v37_v10  ;;  %v39_v13 = vpop.xlane.xlu1 %38  ;;  %vm46_vm0 = vweird.f32 %v85_v11 }
 0x101   :  { %86 = vrcp.f32 %v39_v13  ;;  %vm47_vm2 = vmor %vm45_vm1, %vm46_vm0  ;;  %v66_v26 = vand.u32 2147483648, %v39_v13  ;;  %v64_v28 = vand.u32 2147483647, %v39_v13  ;;  %vm60_vm5 = vweird.f32 %v39_v13 }
 0x102   :  { %v42_v14 = vsub.f32 1.0, %v41_v12 }
 0x103   :  { %v67_v30 = vor.u32 1.1754944e-38, %v66_v26  ;;  %vm65_vm7 = vcmp.eq.f32.partialorder %v64_v28, 8.507059e+37 }
 0x104   :  { %v43_v16 = vmul.f32 %v85_v11, %v42_v14 }
 0x106   :  { %v44_v18 = vadd.f32 %v85_v11, %v43_v16 }
 0x107   :  { %v87_v19 = vpop.eup %86 }
 0x108   :  { %v48_v21 = vsel %vm47_vm2, %v85_v11, %v44_v18  ;;  %v56_v22 = vmul.f32 %v87_v19, %v39_v13  ;;  %vm61_vm4 = vweird.f32 %v87_v19 }
 0x109   :  { %v53_v23 = vsel %vm50_vm3, %v52_v20, %v48_v21  ;;  %vm62_vm6 = vmor %vm60_vm5, %vm61_vm4 }
 0x10a   :  { %v54_v24 = vmul.f32 %v81_v7, %v53_v23  ;;  %v57_v25 = vsub.f32 1.0, %v56_v22 }
 0x10c   :  { %70 = vst [vmem:[%s137_s1] sm:$0xff] %v54_v24  ;;  %v58_v27 = vmul.f32 %v87_v19, %v57_v25 }
 0x10e   :  { %v59_v29 = vadd.f32 %v87_v19, %v58_v27 }
 0x110   :  { %v63_v31 = vsel %vm62_vm6, %v87_v19, %v59_v29 }
 0x111   :  { %v68_v32 = vsel %vm65_vm7, %v67_v30, %v63_v31 }
 0x112   :  { %v69_v33 = vmul.f32 %v83_v9, %v68_v32 }
 0x114   :  { %71 = vst [vmem:[%s137_s1 + $0x8] sm:$0xff] %v69_v33 }
 0x115   :  { %76 = vsyncpa [#allocation3], 1 }

</bundles_post_ra>
